<compile_context>
chip_gen: v6e
topology: v6e:2x2x1
jax: 0.10.0
libtpu: 0.0.40
codegen_flags: <defaults>
</compile_context>

<pallas_src>
import functools

import jax
import jax.numpy as jnp
from jax.experimental import pallas as pl
from jax.experimental.pallas import tpu as pltpu


def _mlp_kernel(x_ref, w1_ref, b1_ref, w2_ref, b2_ref, o_ref, *, mxu_dtype=None):
    # x_ref : (TB, D)     streamed activations (native f32, no padding)
    # w1_ref: (D, 16)     fc1 weight, (in, out) layout, resident across steps
    # b1_ref: (1, 16)     fc1 bias
    # w2_ref: (1, 16)     fc2 weight laid out as a row
    # b2_ref: (1, 1)      fc2 bias
    # o_ref : (TB, 1)     sigmoid output (f32)
    x = x_ref[...]
    w1 = w1_ref[...]
    if mxu_dtype is not None:
        # In-VMEM cast (cheap VPU op, zero extra HBM traffic) so the MXU runs
        # a single-pass bf16 matmul; accumulation stays f32.
        x = x.astype(mxu_dtype)
        w1 = w1.astype(mxu_dtype)
    # fc1 on the MXU (f32 accumulation), bias + ReLU on the VPU.
    h = jnp.dot(x, w1, preferred_element_type=jnp.float32) + b1_ref[...]
    h = jnp.maximum(h, 0.0)
    # fc2 as VPU multiply + cross-lane (XLU) reduction instead of a width-1
    # MXU matmul (avoids MRF push/pop for a 1-wide result).
    z = jnp.sum(h * w2_ref[...], axis=-1, keepdims=True) + b2_ref[...]
    o_ref[...] = jax.nn.sigmoid(z)


def _round_up(v, m):
    return ((v + m - 1) // m) * m


def _vmem_block_footprint(tb, d, hidden):
    """Double-buffered VMEM bytes of all pipelined blocks ((8,128)-tile padded)."""
    x_blk = _round_up(tb, 8) * _round_up(d, 128) * 4
    w1_blk = _round_up(d, 8) * _round_up(hidden, 128) * 4
    vec_blk = 8 * 128 * 4                      # b1 / w2 / b2 blocks
    out_blk = _round_up(tb, 8) * 128 * 4
    return 2 * (x_blk + w1_blk + 3 * vec_blk + out_blk)


def _pick_block_batch(batch, d, *, target_bytes=4 << 20, min_tiles=2):
    """Batch tile TB (multiple of 8, or the full batch).

    One x block targets ~target_bytes (double-buffered stream stays well under
    every generation's default scoped VMEM), and TB is capped so the grid has
    at least `min_tiles` steps when the batch is large enough -- that lets
    v7x's two TensorCores split the "parallel" batch axis (negligible extra
    per-step overhead on 1-TC chips).
    """
    row_bytes = max(1, d * 4)
    tb = max(8, (target_bytes // row_bytes) // 8 * 8)
    if min_tiles > 1 and batch >= min_tiles * 128:
        tb = min(tb, _round_up(pl.cdiv(batch, min_tiles), 8))
    if tb >= batch:
        tb = batch            # one exact block (block dim == full array dim)
    return tb


def more_simple_nn_forward(x, w1, b1, w2, b2, *, block_batch=None,
                           mxu_dtype=None):
    """Forward pass of moreSimpleNN.

    x : (B, L, F) float32 (or already-flat (B, D))
    w1: (D, 16)  fc1 weight stored as (in, out)   b1: (16,)
    w2: (16, 1)  fc2 weight stored as (in, out)   b2: (1,)
    mxu_dtype: None -> full-precision matmul; jnp.bfloat16 -> in-kernel cast
               for a single-pass MXU matmul (f32 accumulation).
    returns (B, 1) float32
    """
    batch = x.shape[0]
    x2d = x.reshape(batch, -1)            # nn.Flatten (row-major merge, no copy)
    d = x2d.shape[1]
    hidden = w1.shape[1]                  # 16
    assert w1.shape[0] == d

    # ---- batch tile: no padding of x, cdiv grid with clipped tail ----------
    if block_batch is None:
        tb = _pick_block_batch(batch, d)
    else:
        tb = max(8, (int(block_batch) // 8) * 8)
        if tb >= batch:
            tb = batch
    # VMEM guard: shrink TB if a large D would blow the double-buffered budget.
    budget = 24 << 20
    while _vmem_block_footprint(tb, d, hidden) > budget and tb > 8:
        tb = max(8, (tb // 2) // 8 * 8)
    # TODO(synk): for very large flattened D the resident (D, 16) weight block
    # alone can exceed the budget; that case needs a K-tiled ("arbitrary")
    # grid axis with an f32 accumulator scratch.

    footprint = _vmem_block_footprint(tb, d, hidden)
    vmem_limit = int(min(48 << 20, max(32 << 20, footprint + (8 << 20))))

    b1r = b1.reshape(1, hidden).astype(jnp.float32)
    w2r = w2.reshape(1, hidden).astype(jnp.float32)   # (16, 1) -> row (1, 16)
    b2r = b2.reshape(1, 1).astype(jnp.float32)

    num_tiles = pl.cdiv(batch, tb)

    cost = pl.CostEstimate(
        flops=2 * batch * d * hidden + 4 * batch * hidden,
        transcendentals=batch,
        bytes_accessed=(batch * d + d * hidden) * 4
                       + (2 * hidden + 1) * 4 + batch * 4,
    )

    out = pl.pallas_call(
        functools.partial(_mlp_kernel, mxu_dtype=mxu_dtype),
        out_shape=jax.ShapeDtypeStruct((batch, 1), jnp.float32),
        grid=(num_tiles,),
        in_specs=[
            # x: streamed; last block dim == full D (no feature padding), each
            # tile is one contiguous HBM DMA of full rows.
            pl.BlockSpec((tb, d), lambda i: (i, 0)),
            pl.BlockSpec((d, hidden), lambda i: (0, 0)),    # w1: resident
            pl.BlockSpec((1, hidden), lambda i: (0, 0)),    # b1
            pl.BlockSpec((1, hidden), lambda i: (0, 0)),    # w2 (row)
            pl.BlockSpec((1, 1), lambda i: (0, 0)),         # b2
        ],
        # Non-divisible tail tile: out-of-bounds output rows are dropped on the
        # write side; rows are independent, so the unspecified tail reads never
        # contaminate valid rows.
        out_specs=pl.BlockSpec((tb, 1), lambda i: (i, 0)),
        compiler_params=pltpu.CompilerParams(
            dimension_semantics=("parallel",),   # shard batch tiles across TCs (v7x)
            vmem_limit_bytes=vmem_limit,
        ),
        cost_estimate=cost,
    )(x2d, w1, b1r, w2r, b2r)

    return out


def _init_params(key, input_size):
    """PyTorch-style nn.Linear init; weights stored transposed as (in, out)."""
    k1, k2, k3, k4 = jax.random.split(key, 4)
    bound1 = 1.0 / jnp.sqrt(jnp.float32(input_size))
    bound2 = 1.0 / jnp.sqrt(jnp.float32(16))
    w1 = jax.random.uniform(k1, (input_size, 16), jnp.float32, -bound1, bound1)
    b1 = jax.random.uniform(k2, (16,), jnp.float32, -bound1, bound1)
    w2 = jax.random.uniform(k3, (16, 1), jnp.float32, -bound2, bound2)
    b2 = jax.random.uniform(k4, (1,), jnp.float32, -bound2, bound2)
    return w1, b1, w2, b2


if __name__ == "__main__":
    key = jax.random.PRNGKey(0)
    kx, kp = jax.random.split(key)

    # Shapes consistent with the module: X_train is (N, seq, feat),
    # input_size = seq * feat = 32.  B=300 exercises the >=2-tile split
    # (auto tile -> 152/148 rows) and the clipped non-divisible tail tile.
    B, L, F = 300, 8, 4
    input_size = L * F

    x = jax.random.normal(kx, (B, L, F), dtype=jnp.float32)
    w1, b1, w2, b2 = _init_params(kp, input_size)

    # Plain-JAX reference (same math as the PyTorch module).
    ref = jax.nn.sigmoid(
        jnp.maximum(x.reshape(B, -1) @ w1 + b1, 0.0) @ w2 + b2)

    # Default path: f32 streaming, auto tile (grid of 2, clipped tail).
    out = jax.block_until_ready(more_simple_nn_forward(x, w1, b1, w2, b2))
    assert out.shape == (B, 1)
    assert jnp.allclose(out, ref, atol=5e-5, rtol=1e-5)

    # Explicit 128-row tiles -> grid of 3 pipelined steps (another tail case).
    out_t = jax.block_until_ready(
        more_simple_nn_forward(x, w1, b1, w2, b2, block_batch=128))
    assert jnp.allclose(out_t, ref, atol=5e-5, rtol=1e-5)

    # In-kernel bf16 MXU path (single-pass matmul, f32 accumulation).
    out_bf16 = jax.block_until_ready(
        more_simple_nn_forward(x, w1, b1, w2, b2, mxu_dtype=jnp.bfloat16))
    assert out_bf16.shape == (B, 1)
    assert jnp.allclose(out_bf16, ref, atol=2e-2, rtol=0)

    print("KERNEL_OK")
</pallas_src>

<mosaic_0001>
module attributes {stable_mosaic.version = 11 : i64} {
  func.func @_mlp_kernel(%arg0: i32, %arg1: memref<152x32xf32, #tpu.memory_space<vmem>>, %arg2: memref<32x16xf32, #tpu.memory_space<vmem>>, %arg3: memref<1x16xf32, #tpu.memory_space<vmem>>, %arg4: memref<1x16xf32, #tpu.memory_space<vmem>>, %arg5: memref<1x1xf32, #tpu.memory_space<vmem>>, %arg6: memref<152x1xf32, #tpu.memory_space<vmem>>) attributes {dimension_semantics = [#tpu.dimension_semantics<parallel>], iteration_bounds = array<i64: 2>, scalar_prefetch = 0 : i64, scratch_operands = 0 : i64, tpu.core_type = #tpu.core_type<tc>, window_params = [{transform_indices = @transform_0, window_bounds = array<i64: 152, 32>}, {pipeline_mode = #tpu.pipeline_mode<synchronous>, transform_indices = @transform_1, window_bounds = array<i64: 32, 16>}, {pipeline_mode = #tpu.pipeline_mode<synchronous>, transform_indices = @transform_2, window_bounds = array<i64: 1, 16>}, {pipeline_mode = #tpu.pipeline_mode<synchronous>, transform_indices = @transform_3, window_bounds = array<i64: 1, 16>}, {pipeline_mode = #tpu.pipeline_mode<synchronous>, transform_indices = @transform_4, window_bounds = array<i64: 1, 1>}, {transform_indices = @transform_5, window_bounds = array<i64: 152, 1>}]} {
    %c0 = arith.constant 0 : index
    %c0_0 = arith.constant 0 : index
    %0 = vector.load %arg1[%c0, %c0_0] : memref<152x32xf32, #tpu.memory_space<vmem>>, vector<152x32xf32>
    %c0_1 = arith.constant 0 : index
    %c0_2 = arith.constant 0 : index
    %1 = vector.load %arg2[%c0_1, %c0_2] : memref<32x16xf32, #tpu.memory_space<vmem>>, vector<32x16xf32>
    %cst = arith.constant dense<0.000000e+00> : vector<152x16xf32>
    %2 = tpu.matmul %0, %1, %cst {dimension_numbers = #tpu.dot_dimension_numbers<[1], [0], [0], [1], [0, 0, 1, 1], [], []>} : vector<152x32xf32>, vector<32x16xf32>, vector<152x16xf32> -> vector<152x16xf32>
    %c0_3 = arith.constant 0 : index
    %c0_4 = arith.constant 0 : index
    %3 = vector.load %arg3[%c0_3, %c0_4] : memref<1x16xf32, #tpu.memory_space<vmem>>, vector<1x16xf32>
    %4 = vector.broadcast %3 : vector<1x16xf32> to vector<152x16xf32>
    %5 = arith.addf %2, %4 : vector<152x16xf32>
    %cst_5 = arith.constant 0.000000e+00 : f32
    %6 = vector.broadcast %cst_5 : f32 to vector<152x16xf32>
    %7 = arith.maximumf %5, %6 : vector<152x16xf32>
    %c0_6 = arith.constant 0 : index
    %c0_7 = arith.constant 0 : index
    %8 = vector.load %arg4[%c0_6, %c0_7] : memref<1x16xf32, #tpu.memory_space<vmem>>, vector<1x16xf32>
    %9 = vector.broadcast %8 : vector<1x16xf32> to vector<152x16xf32>
    %10 = arith.mulf %7, %9 : vector<152x16xf32>
    %cst_8 = arith.constant dense<0.000000e+00> : vector<152xf32>
    %11 = vector.multi_reduction <add>, %10, %cst_8 [1] : vector<152x16xf32> to vector<152xf32>
    %12 = vector.shape_cast %11 : vector<152xf32> to vector<152x1xf32>
    %c0_9 = arith.constant 0 : index
    %c0_10 = arith.constant 0 : index
    %13 = vector.load %arg5[%c0_9, %c0_10] : memref<1x1xf32, #tpu.memory_space<vmem>>, vector<1x1xf32>
    %14 = vector.broadcast %13 : vector<1x1xf32> to vector<152x1xf32>
    %15 = arith.addf %12, %14 : vector<152x1xf32>
    %16 = arith.negf %15 : vector<152x1xf32>
    %17 = math.exp %16 : vector<152x1xf32>
    %cst_11 = arith.constant 1.000000e+00 : f32
    %18 = vector.broadcast %cst_11 : f32 to vector<152x1xf32>
    %19 = arith.addf %18, %17 : vector<152x1xf32>
    %20 = arith.divf %18, %19 : vector<152x1xf32>
    %c0_12 = arith.constant 0 : index
    %c0_13 = arith.constant 0 : index
    %21 = vector.load %arg6[%c0_12, %c0_13] : memref<152x1xf32, #tpu.memory_space<vmem>>, vector<152x1xf32>
    tpu.vector_store %arg6[%c0_12, %c0_13], %20 {strides = array<i32>} : memref<152x1xf32, #tpu.memory_space<vmem>>, vector<152x1xf32>,
    return
  }
  func.func @transform_0(%arg0: i32) -> (i32, i32) {
    %c0_i32 = arith.constant 0 : i32
    %c0_i32_0 = arith.constant 0 : i32
    return %arg0, %c0_i32 : i32, i32
  }
  func.func @transform_1(%arg0: i32) -> (i32, i32) {
    %c0_i32 = arith.constant 0 : i32
    %c0_i32_0 = arith.constant 0 : i32
    %c0_i32_1 = arith.constant 0 : i32
    return %c0_i32, %c0_i32_0 : i32, i32
  }
  func.func @transform_2(%arg0: i32) -> (i32, i32) {
    %c0_i32 = arith.constant 0 : i32
    %c0_i32_0 = arith.constant 0 : i32
    %c0_i32_1 = arith.constant 0 : i32
    return %c0_i32, %c0_i32_0 : i32, i32
  }
  func.func @transform_3(%arg0: i32) -> (i32, i32) {
    %c0_i32 = arith.constant 0 : i32
    %c0_i32_0 = arith.constant 0 : i32
    %c0_i32_1 = arith.constant 0 : i32
    return %c0_i32, %c0_i32_0 : i32, i32
  }
  func.func @transform_4(%arg0: i32) -> (i32, i32) {
    %c0_i32 = arith.constant 0 : i32
    %c0_i32_0 = arith.constant 0 : i32
    %c0_i32_1 = arith.constant 0 : i32
    return %c0_i32, %c0_i32_0 : i32, i32
  }
  func.func @transform_5(%arg0: i32) -> (i32, i32) {
    %c0_i32 = arith.constant 0 : i32
    %c0_i32_0 = arith.constant 0 : i32
    return %arg0, %c0_i32 : i32, i32
  }
}

</mosaic_0001>

<bundles_post_ra>
// kernel: tpu_custom_call.1
= control target key start
LH: loop header
LB: loop body
LE: loop exit
PB: predicated region body
PF: predicated region fallthrough
CT: control target
= control target key end

     0   :  { %s1072_s20 = smov 0   ;;  %s1322_s0 = inlined_call_operand.vmem [shape: f32[300,32], index: 0, kind: input, shape index: {}]   ;;  %s1323_s1 = inlined_call_operand.vmem [shape: f32[32,16], index: 1, kind: input, shape index: {}]   ;;  %s1324_s2 = inlined_call_operand.vmem [shape: f32[1,16], index: 2, kind: input, shape index: {}]   ;;  %s1325_s3 = inlined_call_operand.vmem [shape: f32[1,16], index: 3, kind: input, shape index: {}]   ;;  %s1326_s4 = inlined_call_operand.<no memory space> [shape: f32[1,1], index: 4, kind: input, shape index: {}]   ;;  %s1327_s5 = inlined_call_operand.vmem [shape: f32[300,1], index: 5, kind: output, shape index: {}]  }
   0x1   :  { %v10_v0 = vstv %s1326_s4 }
   0x2   :  { %11 = vst [vmem:[#allocation2] sm:$0x1] %v10_v0 }
   0x3 LB: > { %s797_s21 = sadd.s32 4294967295, %s1035_s20   ;;  %p801_p0 = scmp.ge.s32.totalorder %s1035_s20, 1  ;;  %s1035_s20 = sphi %s1072_s20, %s17_s20  }
   0x4   : > { %p190_p1 = scmp.lt.s32.totalorder %s1035_s20, 3 }
   0x6   : > { %p191_p2 = pnand %p801_p0, %p190_p1 }
   0x7   : > { %s218_s4 = smul.u32 (!%p191_p2), 19, %s797_s21 }
   0x8   : > { %194 = sbr.rel (%p191_p2) target bundleno = 436 (0x1b4), region = 40 }
   0x9   : > { %p219_p3 = scmp.lt.s32.totalorder (!%p191_p2), %s218_s4, 37 }
   0xd   : > { %v252_v1 = vld [vmem:[%s1323_s1 + $0x18] sm:$0xff]  ;;  %v1037_v2 = vmov 0.0   ;;  %v251_v3 = vld [vmem:[%s1323_s1 + $0x10] sm:$0xff]  ;;  %v250_v4 = vld [vmem:[%s1323_s1 + $0x8] sm:$0xff]  ;;  %s1329_s4 = smov (!%p219_p3, %s218_s4), 37  ;;  %vm260_vm0 = vcmask 261120  }
   0xe   : > { %870 = vmatprep.subr.mxu0 %v1037_v2  ;;  %935 = vmatprep.subr.mxu1 %v1037_v2  ;;  %v249_v5 = vld [vmem:[%s1323_s1] sm:$0xff]  ;;  %s802_s30 = sshll.u32 %s1329_s4, 3  ;;  %vm1038_vm1 = vmmov 0   ;;  %vm523_vm2 = vcmask 130048   ;;  %vm721_vm3 = vcmask 7168  }
   0xf   : > { %871 = vmatpush3.msra.mxu0 %v252_v1  ;;  %939 = vmatpush3.msra.mxu1 %v252_v1  ;;  %s1108_s8 = scalar_lea.vmem %s1322_s0, %s802_s30  ;;  %v1189_v25 = vld [vmem:[%s1324_s2] ss:$0 sm:$0xff]  ;;  %s1275_s15 = scalar_lea.vmem %s1327_s5, %s802_s30 }
  0x10   : > { %872 = vmatprep.subr.mxu0 %v1037_v2  ;;  %936 = vmatprep.subr.mxu1 %v1037_v2  ;;  %v230_v6 = vld [vmem:[%s1108_s8] sm:$0xff]  ;;  %v240_v7 = vld [vmem:[%s1108_s8 + $0x50] sm:$0xff]  ;;  %v231_v8 = vld [vmem:[%s1108_s8 + $0x8] sm:$0xff] }
  0x11   : > { %873 = vmatpush3.msra.mxu0 %v251_v3  ;;  %940 = vmatpush3.msra.mxu1 %v251_v3  ;;  %v241_v9 = vld [vmem:[%s1108_s8 + $0x58] sm:$0xff]  ;;  %v232_v10 = vld [vmem:[%s1108_s8 + $0x10] sm:$0xff]  ;;  %v242_v11 = vld [vmem:[%s1108_s8 + $0x60] sm:$0xff] }
  0x12   : > { %874 = vmatprep.subr.mxu0 %v1037_v2  ;;  %937 = vmatprep.subr.mxu1 %v1037_v2  ;;  %v233_v12 = vld [vmem:[%s1108_s8 + $0x18] sm:$0xff]  ;;  %v243_v13 = vld [vmem:[%s1108_s8 + $0x68] sm:$0xff]  ;;  %v234_v14 = vld [vmem:[%s1108_s8 + $0x20] sm:$0xff] }
  0x13   : > { %875 = vmatpush3.msra.mxu0 %v250_v4  ;;  %941 = vmatpush3.msra.mxu1 %v250_v4  ;;  %v244_v15 = vld [vmem:[%s1108_s8 + $0x70] sm:$0xff]  ;;  %v235_v16 = vld [vmem:[%s1108_s8 + $0x28] sm:$0xff]  ;;  %v245_v17 = vld [vmem:[%s1108_s8 + $0x78] sm:$0xff] }
  0x14   : > { %876 = vmatprep.subr.mxu0 %v1037_v2  ;;  %938 = vmatprep.subr.mxu1 %v1037_v2  ;;  %v236_v18 = vld [vmem:[%s1108_s8 + $0x30] sm:$0xff]  ;;  %v246_v19 = vld [vmem:[%s1108_s8 + $0x80] sm:$0xff]  ;;  %v237_v20 = vld [vmem:[%s1108_s8 + $0x38] sm:$0xff] }
  0x15   : > { %877 = vmatpush3.msra.mxu0 %v249_v5  ;;  %942 = vmatpush3.msra.mxu1 %v249_v5  ;;  %v247_v21 = vld [vmem:[%s1108_s8 + $0x88] sm:$0xff]  ;;  %v238_v22 = vld [vmem:[%s1108_s8 + $0x40] sm:$0xff]  ;;  %v248_v23 = vld [vmem:[%s1108_s8 + $0x90] sm:$0xff] }
  0x16   : > { %878 = vmatprep.mubr.msk.f32.mxu0 %vm1038_vm1, %v1037_v2  ;;  %908 = vmatprep.mubr.msk.f32.mxu1 %vm1038_vm1, %v1037_v2  ;;  %v239_v24 = vld [vmem:[%s1108_s8 + $0x48] sm:$0xff]  ;;  %v1196_v32 = vld [vmem:[%s1325_s3] ss:$0 sm:$0xff] }
  0x17   : > { %879 = vmatmul.mubr.msk.f32.vlgmr.msra.gmra.mxu0 %vm260_vm0, %v230_v6  ;;  %909 = vmatmul.mubr.msk.f32.vlgmr.msra.gmra.mxu1 %vm260_vm0, %v240_v7 }
  0x18   : > { %881 = vmatprep.mubr.msk.f32.mxu0 %vm1038_vm1, %v1037_v2  ;;  %911 = vmatprep.mubr.msk.f32.mxu1 %vm1038_vm1, %v1037_v2 }
  0x1b   : > { %882 = vmatmul.mubr.msk.f32.gmra.mxu0 %vm260_vm0, %v231_v8  ;;  %912 = vmatmul.mubr.msk.f32.gmra.mxu1 %vm260_vm0, %v241_v9 }
  0x1c   : > { %884 = vmatprep.mubr.msk.f32.mxu0 %vm1038_vm1, %v1037_v2  ;;  %914 = vmatprep.mubr.msk.f32.mxu1 %vm1038_vm1, %v1037_v2 }
  0x1f   : > { %885 = vmatmul.mubr.msk.f32.gmra.mxu0 %vm260_vm0, %v232_v10  ;;  %915 = vmatmul.mubr.msk.f32.gmra.mxu1 %vm260_vm0, %v242_v11 }
  0x20   : > { %887 = vmatprep.mubr.msk.f32.mxu0 %vm1038_vm1, %v1037_v2  ;;  %917 = vmatprep.mubr.msk.f32.mxu1 %vm1038_vm1, %v1037_v2 }
  0x23   : > { %888 = vmatmul.mubr.msk.f32.gmra.mxu0 %vm260_vm0, %v233_v12  ;;  %918 = vmatmul.mubr.msk.f32.gmra.mxu1 %vm260_vm0, %v243_v13 }
  0x24   : > { %890 = vmatprep.mubr.msk.f32.mxu0 %vm1038_vm1, %v1037_v2  ;;  %920 = vmatprep.mubr.msk.f32.mxu1 %vm1038_vm1, %v1037_v2 }
  0x27   : > { %891 = vmatmul.mubr.msk.f32.gmra.mxu0 %vm260_vm0, %v234_v14  ;;  %921 = vmatmul.mubr.msk.f32.gmra.mxu1 %vm260_vm0, %v244_v15 }
  0x28   : > { %893 = vmatprep.mubr.msk.f32.mxu0 %vm1038_vm1, %v1037_v2  ;;  %923 = vmatprep.mubr.msk.f32.mxu1 %vm1038_vm1, %v1037_v2 }
  0x2b   : > { %894 = vmatmul.mubr.msk.f32.gmra.mxu0 %vm260_vm0, %v235_v16  ;;  %924 = vmatmul.mubr.msk.f32.gmra.mxu1 %vm260_vm0, %v245_v17 }
  0x2c   : > { %896 = vmatprep.mubr.msk.f32.mxu0 %vm1038_vm1, %v1037_v2  ;;  %926 = vmatprep.mubr.msk.f32.mxu1 %vm1038_vm1, %v1037_v2 }
  0x2f   : > { %897 = vmatmul.mubr.msk.f32.gmra.mxu0 %vm260_vm0, %v236_v18  ;;  %927 = vmatmul.mubr.msk.f32.gmra.mxu1 %vm260_vm0, %v246_v19 }
  0x30   : > { %899 = vmatprep.mubr.msk.f32.mxu0 %vm1038_vm1, %v1037_v2  ;;  %929 = vmatprep.mubr.msk.f32.mxu1 %vm1038_vm1, %v1037_v2 }
  0x33   : > { %900 = vmatmul.mubr.msk.f32.gmra.mxu0 %vm260_vm0, %v237_v20  ;;  %930 = vmatmul.mubr.msk.f32.gmra.mxu1 %vm260_vm0, %v247_v21 }
  0x34   : > { %902 = vmatprep.mubr.msk.f32.mxu0 %vm1038_vm1, %v1037_v2  ;;  %932 = vmatprep.mubr.msk.f32.mxu1 %vm1038_vm1, %v1037_v2 }
  0x37   : > { %903 = vmatmul.mubr.msk.f32.gmra.mxu0 %vm260_vm0, %v238_v22  ;;  %933 = vmatmul.mubr.msk.f32.gmra.mxu1 %vm260_vm0, %v248_v23 }
  0x38   : > { %905 = vmatprep.mubr.msk.f32.mxu0 %vm1038_vm1, %v1037_v2 }
  0x3b   : > { %906 = vmatmul.mubr.msk.f32.gmra.mxu0 %vm260_vm0, %v239_v24 }
  0xd7   : > { %v384_v26 = vpop.f32.mrf.mxu0  ;;  %v434_v27 = vpop.f32.mrf.mxu1 }
  0xd8   : > { %v385_v28 = vadd.f32 %v1189_v25, %v384_v26  ;;  %v435_v29 = vadd.f32 %v1189_v25, %v434_v27 }
  0xd9   : > { %v880_v30 = vpop.f32.mrf.mxu0  ;;  %v910_v31 = vpop.f32.mrf.mxu1 }
  0xda   : > { %v478_v33 = vmax.f32 %v385_v28, 0.0  ;;  %v488_v34 = vmax.f32 %v435_v29, 0.0 }
  0xdb   : > { %v389_v35 = vpop.f32.mrf.mxu0  ;;  %v439_v36 = vpop.f32.mrf.mxu1 }
  0xdc   : > { %v390_v37 = vadd.f32 %v1189_v25, %v389_v35  ;;  %v440_v38 = vadd.f32 %v1189_v25, %v439_v36  ;;  %v504_v39 = vmul.f32 %v1196_v32, %v478_v33  ;;  %v514_v40 = vmul.f32 %v1196_v32, %v488_v34 }
  0xdd   : > { %v883_v41 = vpop.f32.mrf.mxu0  ;;  %v913_v42 = vpop.f32.mrf.mxu1 }
  0xde   : > { %v479_v43 = vmax.f32 %v390_v37, 0.0  ;;  %v489_v44 = vmax.f32 %v440_v38, 0.0  ;;  %v524_v45 = vsel %vm523_vm2, %v504_v39, 0.0  ;;  %v554_v51 = vsel %vm523_vm2, %v514_v40, 0.0 }
  0xdf   : > { %525 = vadd.xlane.f32.xlu0 %v524_v45  ;;  %v394_v46 = vpop.f32.mrf.mxu0  ;;  %v444_v47 = vpop.f32.mrf.mxu1 }
  0xe0   : > { %v395_v48 = vadd.f32 %v1189_v25, %v394_v46  ;;  %v515_v49 = vmul.f32 %v1196_v32, %v489_v44  ;;  %v445_v50 = vadd.f32 %v1189_v25, %v444_v47  ;;  %v505_v57 = vmul.f32 %v1196_v32, %v479_v43 }
  0xe1   : > { %v886_v52 = vpop.f32.mrf.mxu0  ;;  %v916_v53 = vpop.f32.mrf.mxu1 }
  0xe2   : > { %v480_v54 = vmax.f32 %v395_v48, 0.0  ;;  %v557_v55 = vsel %vm523_vm2, %v515_v49, 0.0  ;;  %v490_v56 = vmax.f32 %v445_v50, 0.0  ;;  %v527_v4 = vsel %vm523_vm2, %v505_v57, 0.0 }
  0xe3   : > { %558 = vadd.xlane.f32.xlu1 %v557_v55  ;;  %555 = vadd.xlane.f32.xlu0 %v554_v51  ;;  %v399_v58 = vpop.f32.mrf.mxu0  ;;  %v449_v59 = vpop.f32.mrf.mxu1 }
  0xe4   : > { %v400_v60 = vadd.f32 %v1189_v25, %v399_v58  ;;  %v450_v61 = vadd.f32 %v1189_v25, %v449_v59  ;;  %v506_v62 = vmul.f32 %v1196_v32, %v480_v54  ;;  %v516_v63 = vmul.f32 %v1196_v32, %v490_v56 }
  0xe5   : > { %v889_v0 = vpop.f32.mrf.mxu0  ;;  %v919_v1 = vpop.f32.mrf.mxu1 }
  0xe6   : > { %v481_v2 = vmax.f32 %v400_v60, 0.0  ;;  %v491_v3 = vmax.f32 %v450_v61, 0.0  ;;  %v530_v5 = vsel %vm523_vm2, %v506_v62, 0.0  ;;  %v560_v8 = vsel %vm523_vm2, %v516_v63, 0.0 }
  0xe7   : > { %528 = vadd.xlane.f32.xlu0 %v527_v4  ;;  %531 = vadd.xlane.f32.xlu1 %v530_v5  ;;  %v404_v6 = vpop.f32.mrf.mxu0  ;;  %v454_v7 = vpop.f32.mrf.mxu1 }
  0xe8   : > { %v405_v9 = vadd.f32 %v1189_v25, %v404_v6  ;;  %v455_v10 = vadd.f32 %v1189_v25, %v454_v7  ;;  %v507_v11 = vmul.f32 %v1196_v32, %v481_v2  ;;  %v517_v12 = vmul.f32 %v1196_v32, %v491_v3 }
  0xe9   : > { %v892_v13 = vpop.f32.mrf.mxu0  ;;  %v922_v14 = vpop.f32.mrf.mxu1 }
  0xea   : > { %v482_v15 = vmax.f32 %v405_v9, 0.0  ;;  %v492_v16 = vmax.f32 %v455_v10, 0.0  ;;  %v533_v17 = vsel %vm523_vm2, %v507_v11, 0.0  ;;  %v563_v20 = vsel %vm523_vm2, %v517_v12, 0.0  ;;  %v1253_v14 = vld [vmem:[#allocation2] ss:$0 sm:$0xff] }
  0xeb   : > { %561 = vadd.xlane.f32.xlu0 %v560_v8  ;;  %534 = vadd.xlane.f32.xlu1 %v533_v17  ;;  %v409_v18 = vpop.f32.mrf.mxu0  ;;  %v459_v19 = vpop.f32.mrf.mxu1 }
  0xec   : > { %v410_v21 = vadd.f32 %v1189_v25, %v409_v18  ;;  %v460_v22 = vadd.f32 %v1189_v25, %v459_v19  ;;  %v508_v23 = vmul.f32 %v1196_v32, %v482_v15  ;;  %v518_v24 = vmul.f32 %v1196_v32, %v492_v16 }
  0xed   : > { %v895_v26 = vpop.f32.mrf.mxu0  ;;  %v925_v27 = vpop.f32.mrf.mxu1 }
  0xee   : > { %v483_v28 = vmax.f32 %v410_v21, 0.0  ;;  %v493_v29 = vmax.f32 %v460_v22, 0.0  ;;  %v536_v30 = vsel %vm523_vm2, %v508_v23, 0.0  ;;  %v566_v34 = vsel %vm523_vm2, %v518_v24, 0.0 }
  0xef   : > { %564 = vadd.xlane.f32.xlu1 %v563_v20  ;;  %537 = vadd.xlane.f32.xlu0 %v536_v30  ;;  %v414_v31 = vpop.f32.mrf.mxu0  ;;  %v464_v33 = vpop.f32.mrf.mxu1 }
  0xf0   : > { %v415_v35 = vadd.f32 %v1189_v25, %v414_v31  ;;  %v465_v36 = vadd.f32 %v1189_v25, %v464_v33  ;;  %v509_v37 = vmul.f32 %v1196_v32, %v483_v28  ;;  %v519_v38 = vmul.f32 %v1196_v32, %v493_v29 }
  0xf1   : > { %v898_v39 = vpop.f32.mrf.mxu0  ;;  %v928_v40 = vpop.f32.mrf.mxu1 }
  0xf2   : > { %v484_v41 = vmax.f32 %v415_v35, 0.0  ;;  %v494_v42 = vmax.f32 %v465_v36, 0.0  ;;  %v539_v43 = vsel %vm523_vm2, %v509_v37, 0.0  ;;  %v569_v47 = vsel %vm523_vm2, %v519_v38, 0.0 }
  0xf3   : > { %567 = vadd.xlane.f32.xlu0 %v566_v34  ;;  %540 = vadd.xlane.f32.xlu1 %v539_v43  ;;  %v419_v44 = vpop.f32.mrf.mxu0  ;;  %v469_v45 = vpop.f32.mrf.mxu1 }
  0xf4   : > { %v420_v46 = vadd.f32 %v1189_v25, %v419_v44  ;;  %v510_v48 = vmul.f32 %v1196_v32, %v484_v41  ;;  %v520_v49 = vmul.f32 %v1196_v32, %v494_v42  ;;  %v470_v63 = vadd.f32 %v1189_v25, %v469_v45 }
  0xf5   : > { %v901_v50 = vpop.f32.mrf.mxu0  ;;  %v931_v51 = vpop.f32.mrf.mxu1 }
  0xf6   : > { %v485_v52 = vmax.f32 %v420_v46, 0.0  ;;  %v542_v53 = vsel %vm523_vm2, %v510_v48, 0.0  ;;  %v572_v57 = vsel %vm523_vm2, %v520_v49, 0.0  ;;  %v495_v7 = vmax.f32 %v470_v63, 0.0 }
  0xf7   : > { %570 = vadd.xlane.f32.xlu1 %v569_v47  ;;  %543 = vadd.xlane.f32.xlu0 %v542_v53  ;;  %v424_v54 = vpop.f32.mrf.mxu0  ;;  %v474_v55 = vpop.f32.mrf.mxu1 }
  0xf8   : > { %v425_v56 = vadd.f32 %v1189_v25, %v424_v54  ;;  %v511_v58 = vmul.f32 %v1196_v32, %v485_v52  ;;  %v475_v59 = vadd.f32 %v1189_v25, %v474_v55  ;;  %v521_v13 = vmul.f32 %v1196_v32, %v495_v7 }
  0xf9   : > { %v904_v60 = vpop.f32.mrf.mxu0  ;;  %v934_v61 = vpop.f32.mrf.mxu1 }
  0xfa   : > { %v486_v62 = vmax.f32 %v425_v56, 0.0  ;;  %v545_v0 = vsel %vm523_vm2, %v511_v58, 0.0  ;;  %v496_v1 = vmax.f32 %v475_v59, 0.0 }
  0xfb   : > { %573 = vadd.xlane.f32.xlu0 %v572_v57  ;;  %546 = vadd.xlane.f32.xlu1 %v545_v0  ;;  %v429_v2 = vpop.f32.mrf.mxu0 }
  0xfc   : > { %v430_v3 = vadd.f32 %v1189_v25, %v429_v2  ;;  %v512_v4 = vmul.f32 %v1196_v32, %v486_v62  ;;  %v522_v5 = vmul.f32 %v1196_v32, %v496_v1  ;;  %v575_v25 = vsel %vm523_vm2, %v521_v13, 0.0 }
  0xfd   : > { %v907_v6 = vpop.f32.mrf.mxu0 }
  0xfe   : > { %v487_v8 = vmax.f32 %v430_v3, 0.0  ;;  %v548_v9 = vsel %vm523_vm2, %v512_v4, 0.0  ;;  %v578_v11 = vsel %vm523_vm2, %v522_v5, 0.0 }
  0xff   : > { %549 = vadd.xlane.f32.xlu0 %v548_v9 }
 0x100   : > { %v513_v10 = vmul.f32 %v1196_v32, %v487_v8 }
 0x102   : > { %v551_v12 = vsel %vm523_vm2, %v513_v10, 0.0 }
 0x103   : > { %552 = vadd.xlane.f32.xlu1 %v551_v12  ;;  %579 = vadd.xlane.f32.xlu0 %v578_v11 }
 0x107   : > { %576 = vadd.xlane.f32.xlu1 %v575_v25 }
 0x168   : > { %v526_v15 = vpop.xlane.xlu0 %525 }
 0x169   : > { %v588_v16 = vadd.f32 %v1253_v14, %v526_v15 }
 0x16b   : > { %v826_v17 = vmul.f32 -1.442695, %v588_v16 }
 0x16c   : > { %v559_v18 = vpop.xlane.xlu1 %558  ;;  %v556_v19 = vpop.xlane.xlu0 %555 }
 0x16d   : > { %953 = vpow2.f32 %v826_v17  ;;  %v599_v20 = vadd.f32 %v1253_v14, %v559_v18  ;;  %v598_v21 = vadd.f32 %v1253_v14, %v556_v19 }
 0x16f   : > { %v837_v22 = vmul.f32 -1.442695, %v599_v20  ;;  %v836_v32 = vmul.f32 -1.442695, %v598_v21 }
 0x170   : > { %v529_v23 = vpop.xlane.xlu0 %528  ;;  %v532_v24 = vpop.xlane.xlu1 %531 }
 0x171   : > { %955 = vpow2.f32 %v837_v22  ;;  %v589_v26 = vadd.f32 %v1253_v14, %v529_v23  ;;  %v590_v27 = vadd.f32 %v1253_v14, %v532_v24 }
 0x172   : > { %957 = vpow2.f32 %v836_v32 }
 0x173   : > { %v827_v28 = vmul.f32 -1.442695, %v589_v26  ;;  %v828_v29 = vmul.f32 -1.442695, %v590_v27 }
 0x174   : > { %v562_v30 = vpop.xlane.xlu0 %561  ;;  %v535_v31 = vpop.xlane.xlu1 %534 }
 0x175   : > { %959 = vpow2.f32 %v827_v28  ;;  %v600_v33 = vadd.f32 %v1253_v14, %v562_v30  ;;  %v591_v34 = vadd.f32 %v1253_v14, %v535_v31 }
 0x176   : > { %961 = vpow2.f32 %v828_v29 }
 0x177   : > { %v838_v35 = vmul.f32 -1.442695, %v600_v33  ;;  %v829_v36 = vmul.f32 -1.442695, %v591_v34 }
 0x178   : > { %v565_v37 = vpop.xlane.xlu1 %564  ;;  %v538_v38 = vpop.xlane.xlu0 %537 }
 0x179   : > { %963 = vpow2.f32 %v838_v35  ;;  %v601_v39 = vadd.f32 %v1253_v14, %v565_v37  ;;  %v592_v40 = vadd.f32 %v1253_v14, %v538_v38 }
 0x17a   : > { %v954_v41 = vpop.eup %953  ;;  %965 = vpow2.f32 %v829_v36 }
 0x17b   : > { %v664_v42 = vadd.f32 1.0, %v954_v41  ;;  %v839_v43 = vmul.f32 -1.442695, %v601_v39  ;;  %v830_v44 = vmul.f32 -1.442695, %v592_v40 }
 0x17c   : > { %v568_v45 = vpop.xlane.xlu0 %567  ;;  %v541_v46 = vpop.xlane.xlu1 %540 }
 0x17d   : > { %967 = vrcp.f32 %v664_v42  ;;  %v602_v47 = vadd.f32 %v1253_v14, %v568_v45  ;;  %v593_v48 = vadd.f32 %v1253_v14, %v541_v46 }
 0x17e   : > { %v956_v49 = vpop.eup %955  ;;  %969 = vpow2.f32 %v839_v43 }
 0x17f   : > { %v958_v50 = vpop.eup %957  ;;  %v675_v51 = vadd.f32 1.0, %v956_v49  ;;  %971 = vpow2.f32 %v830_v44  ;;  %v840_v52 = vmul.f32 -1.442695, %v602_v47  ;;  %v831_v54 = vmul.f32 -1.442695, %v593_v48 }
 0x180   : > { %v674_v53 = vadd.f32 1.0, %v958_v50  ;;  %v571_v55 = vpop.xlane.xlu1 %570  ;;  %v544_v56 = vpop.xlane.xlu0 %543 }
 0x181   : > { %973 = vrcp.f32 %v675_v51  ;;  %v603_v57 = vadd.f32 %v1253_v14, %v571_v55  ;;  %v594_v58 = vadd.f32 %v1253_v14, %v544_v56 }
 0x182   : > { %v960_v59 = vpop.eup %959  ;;  %975 = vrcp.f32 %v674_v53 }
 0x183   : > { %v962_v60 = vpop.eup %961  ;;  %v665_v61 = vadd.f32 1.0, %v960_v59  ;;  %977 = vpow2.f32 %v840_v52  ;;  %v841_v62 = vmul.f32 -1.442695, %v603_v57  ;;  %v832_v0 = vmul.f32 -1.442695, %v594_v58 }
 0x184   : > { %v666_v63 = vadd.f32 1.0, %v962_v60  ;;  %979 = vpow2.f32 %v831_v54  ;;  %v574_v1 = vpop.xlane.xlu0 %573  ;;  %v547_v2 = vpop.xlane.xlu1 %546 }
 0x185   : > { %981 = vrcp.f32 %v665_v61  ;;  %v604_v3 = vadd.f32 %v1253_v14, %v574_v1  ;;  %v595_v4 = vadd.f32 %v1253_v14, %v547_v2 }
 0x186   : > { %v964_v5 = vpop.eup %963  ;;  %983 = vrcp.f32 %v666_v63 }
 0x187   : > { %v966_v6 = vpop.eup %965  ;;  %v676_v7 = vadd.f32 1.0, %v964_v5  ;;  %985 = vpow2.f32 %v841_v62  ;;  %v842_v8 = vmul.f32 -1.442695, %v604_v3  ;;  %v833_v10 = vmul.f32 -1.442695, %v595_v4 }
 0x188   : > { %v667_v9 = vadd.f32 1.0, %v966_v6  ;;  %987 = vpow2.f32 %v832_v0  ;;  %v550_v11 = vpop.xlane.xlu0 %549 }
 0x189   : > { %989 = vrcp.f32 %v676_v7  ;;  %v596_v12 = vadd.f32 %v1253_v14, %v550_v11 }
 0x18a   : > { %v968_v13 = vpop.eup %967  ;;  %991 = vrcp.f32 %v667_v9 }
 0x18b   : > { %v970_v25 = vpop.eup %969  ;;  %722 = vst.msk [vmem:[%s1275_s15] sm:$0xff] %vm721_vm3, %v968_v13  ;;  %993 = vpow2.f32 %v842_v8  ;;  %v834_v15 = vmul.f32 -1.442695, %v596_v12 }
 0x18c   : > { %v972_v16 = vpop.eup %971  ;;  %v677_v17 = vadd.f32 1.0, %v970_v25  ;;  %995 = vpow2.f32 %v833_v10  ;;  %v553_v18 = vpop.xlane.xlu1 %552 }
 0x18d   : > { %v580_v19 = vpop.xlane.xlu0 %579  ;;  %v668_v20 = vadd.f32 1.0, %v972_v16  ;;  %997 = vpow2.f32 %v834_v15  ;;  %v597_v21 = vadd.f32 %v1253_v14, %v553_v18 }
 0x18e   : > { %v606_v22 = vadd.f32 %v1253_v14, %v580_v19  ;;  %v974_v32 = vpop.eup %973  ;;  %999 = vrcp.f32 %v677_v17 }
 0x18f   : > { %v976_v23 = vpop.eup %975  ;;  %733 = vst.msk [vmem:[%s1275_s15 + $0x58] sm:$0xff] %vm721_vm3, %v974_v32  ;;  %1001 = vrcp.f32 %v668_v20  ;;  %v835_v24 = vmul.f32 -1.442695, %v597_v21 }
 0x190   : > { %v844_v26 = vmul.f32 -1.442695, %v606_v22  ;;  %v978_v27 = vpop.eup %977  ;;  %732 = vst.msk [vmem:[%s1275_s15 + $0x50] sm:$0xff] %vm721_vm3, %v976_v23  ;;  %v577_v28 = vpop.xlane.xlu1 %576 }
 0x191   : > { %v980_v29 = vpop.eup %979  ;;  %v678_v30 = vadd.f32 1.0, %v978_v27  ;;  %1003 = vpow2.f32 %v835_v24  ;;  %v605_v31 = vadd.f32 %v1253_v14, %v577_v28 }
 0x192   : > { %v982_v33 = vpop.eup %981  ;;  %v669_v34 = vadd.f32 1.0, %v980_v29  ;;  %1005 = vpow2.f32 %v844_v26 }
 0x193   : > { %v984_v35 = vpop.eup %983  ;;  %723 = vst.msk [vmem:[%s1275_s15 + $0x8] sm:$0xff] %vm721_vm3, %v982_v33  ;;  %1007 = vrcp.f32 %v678_v30  ;;  %v843_v36 = vmul.f32 -1.442695, %v605_v31 }
 0x194   : > { %v986_v37 = vpop.eup %985  ;;  %724 = vst.msk [vmem:[%s1275_s15 + $0x10] sm:$0xff] %vm721_vm3, %v984_v35  ;;  %1009 = vrcp.f32 %v669_v34 }
 0x195   : > { %v988_v38 = vpop.eup %987  ;;  %v679_v39 = vadd.f32 1.0, %v986_v37  ;;  %1011 = vpow2.f32 %v843_v36 }
 0x196   : > { %v990_v40 = vpop.eup %989  ;;  %v670_v14 = vadd.f32 1.0, %v988_v38 }
 0x197   : > { %v992_v41 = vpop.eup %991  ;;  %734 = vst.msk [vmem:[%s1275_s15 + $0x60] sm:$0xff] %vm721_vm3, %v990_v40  ;;  %1013 = vrcp.f32 %v679_v39 }
 0x198   : > { %v994_v42 = vpop.eup %993  ;;  %725 = vst.msk [vmem:[%s1275_s15 + $0x18] sm:$0xff] %vm721_vm3, %v992_v41  ;;  %1015 = vrcp.f32 %v670_v14 }
 0x199   : > { %v996_v43 = vpop.eup %995  ;;  %v680_v44 = vadd.f32 1.0, %v994_v42 }
 0x19a   : > { %v998_v45 = vpop.eup %997  ;;  %v671_v46 = vadd.f32 1.0, %v996_v43 }
 0x19b   : > { %v1000_v47 = vpop.eup %999  ;;  %1017 = vrcp.f32 %v680_v44  ;;  %v672_v48 = vadd.f32 1.0, %v998_v45 }
 0x19c   : > { %v1002_v49 = vpop.eup %1001  ;;  %735 = vst.msk [vmem:[%s1275_s15 + $0x68] sm:$0xff] %vm721_vm3, %v1000_v47  ;;  %1019 = vrcp.f32 %v671_v46 }
 0x19d   : > { %726 = vst.msk [vmem:[%s1275_s15 + $0x20] sm:$0xff] %vm721_vm3, %v1002_v49  ;;  %1021 = vrcp.f32 %v672_v48 }
 0x19e   : > { %v1004_v50 = vpop.eup %1003 }
 0x19f   : > { %v1006_v51 = vpop.eup %1005  ;;  %v673_v52 = vadd.f32 1.0, %v1004_v50 }
 0x1a0   : > { %v1008_v53 = vpop.eup %1007  ;;  %v682_v54 = vadd.f32 1.0, %v1006_v51 }
 0x1a1   : > { %v1010_v55 = vpop.eup %1009  ;;  %736 = vst.msk [vmem:[%s1275_s15 + $0x70] sm:$0xff] %vm721_vm3, %v1008_v53  ;;  %1023 = vrcp.f32 %v673_v52 }
 0x1a2   : > { %v1012_v56 = vpop.eup %1011  ;;  %727 = vst.msk [vmem:[%s1275_s15 + $0x28] sm:$0xff] %vm721_vm3, %v1010_v55  ;;  %1025 = vrcp.f32 %v682_v54 }
 0x1a3   : > { %v681_v57 = vadd.f32 1.0, %v1012_v56 }
 0x1a4   : > { %v1014_v58 = vpop.eup %1013 }
 0x1a5   : > { %v1016_v59 = vpop.eup %1015  ;;  %737 = vst.msk [vmem:[%s1275_s15 + $0x78] sm:$0xff] %vm721_vm3, %v1014_v58  ;;  %1027 = vrcp.f32 %v681_v57 }
 0x1a6   : > { %728 = vst.msk [vmem:[%s1275_s15 + $0x30] sm:$0xff] %vm721_vm3, %v1016_v59 }
 0x1a8   : > { %v1018_v60 = vpop.eup %1017 }
 0x1a9   : > { %v1020_v61 = vpop.eup %1019  ;;  %738 = vst.msk [vmem:[%s1275_s15 + $0x80] sm:$0xff] %vm721_vm3, %v1018_v60 }
 0x1aa   : > { %v1022_v62 = vpop.eup %1021  ;;  %729 = vst.msk [vmem:[%s1275_s15 + $0x38] sm:$0xff] %vm721_vm3, %v1020_v61 }
 0x1ab   : > { %730 = vst.msk [vmem:[%s1275_s15 + $0x40] sm:$0xff] %vm721_vm3, %v1022_v62 }
 0x1ae   : > { %v1024_v63 = vpop.eup %1023 }
 0x1af   : > { %v1026_v0 = vpop.eup %1025  ;;  %731 = vst.msk [vmem:[%s1275_s15 + $0x48] sm:$0xff] %vm721_vm3, %v1024_v63 }
 0x1b0   : > { %740 = vst.msk [vmem:[%s1275_s15 + $0x90] sm:$0xff] %vm721_vm3, %v1026_v0 }
 0x1b2   : > { %v1028_v1 = vpop.eup %1027 }
 0x1b3   : > { %739 = vst.msk [vmem:[%s1275_s15 + $0x88] sm:$0xff] %vm721_vm3, %v1028_v1 }
 0x1b4 PF: > { %s17_s20 = sadd.s32 1, %s1035_s20  }
 0x1b5   : > { %p14_p4 = scmp.ge.s32.totalorder %s17_s20, 4  }
 0x1b7   :  { %16 = sbr.rel (!%p14_p4) target bundleno = 3 (0x3), region = 70 }

</bundles_post_ra>
